<compile_context>
chip_gen: v7x
topology: tpu7x:2x2x1
jax: 0.10.0
libtpu: 0.0.40
codegen_flags: <defaults>
</compile_context>

<pallas_src>
import jax
import jax.numpy as jnp
from jax.experimental import pallas as pl
from jax.experimental.pallas import tpu as pltpu


def iris_mlp_kernel(xt_ref, w1_ref, b1_ref, w2_ref, b2_ref, ot_ref):
    # xt_ref: (4, TB)   batch on lanes
    # w1_ref: (16, 4)   b1_ref: (16, 1)
    # w2_ref: (8, 16)   rows 3..7 are zero padding     b2_ref: (8, 1)
    # ot_ref: (8, TB)   rows 3..7 are padding, sliced off in the wrapper
    h = jnp.maximum(
        jnp.dot(w1_ref[...], xt_ref[...], preferred_element_type=jnp.float32)
        + b1_ref[...],
        0.0)                                                      # (16, TB)
    ot_ref[...] = (
        jnp.dot(w2_ref[...], h, preferred_element_type=jnp.float32)
        + b2_ref[...]).astype(ot_ref.dtype)                       # (8, TB)


def iris_classifier_forward(x, w1, b1, w2, b2, *, batch_tile=16384):
    """Fused MLP forward.

    x : (B, 4) float input
    w1: (16, 4), b1: (16,), w2: (3, 16), b2: (3,)   -- PyTorch nn.Linear layouts
    returns (B, 3) float32 logits.
    """
    B = x.shape[0]

    # Lane-dense batch tiles: multiple of 128, at most `batch_tile`, at least 128.
    b128 = pl.cdiv(B, 128) * 128
    tb = max(128, (min(batch_tile, b128) // 128) * 128)
    b_pad = pl.cdiv(B, tb) * tb

    # Feature-major input (features on sublanes, batch on lanes), zero-padded to
    # a whole number of tiles.  pad(transpose) is fusable by XLA (no scatter).
    # TODO(synk): for a real pipeline keep activations feature-major end-to-end
    # so this transpose (and the final one) disappear entirely.
    xt = jnp.pad(x.astype(jnp.float32).T, ((0, 0), (0, b_pad - B)))

    # Pad the 3 output rows to a full 8-sublane group -> unmasked stores/DMA.
    w2p = jnp.zeros((8, 16), jnp.float32).at[:3, :].set(w2.astype(jnp.float32))
    b2p = jnp.zeros((8, 1), jnp.float32).at[:3, 0].set(b2.astype(jnp.float32))

    out_t = pl.pallas_call(
        iris_mlp_kernel,
        out_shape=jax.ShapeDtypeStruct((8, b_pad), jnp.float32),
        grid_spec=pltpu.PrefetchScalarGridSpec(
            num_scalar_prefetch=0,
            grid=(b_pad // tb,),
            in_specs=[
                pl.BlockSpec((4, tb), lambda i: (0, i)),    # x tile (pipelined)
                pl.BlockSpec((16, 4), lambda i: (0, 0)),    # resident W1
                pl.BlockSpec((16, 1), lambda i: (0, 0)),    # resident b1
                pl.BlockSpec((8, 16), lambda i: (0, 0)),    # resident W2 (padded)
                pl.BlockSpec((8, 1), lambda i: (0, 0)),     # resident b2 (padded)
            ],
            out_specs=pl.BlockSpec((8, tb), lambda i: (0, i)),
        ),
        compiler_params=pltpu.CompilerParams(
            dimension_semantics=("parallel",)),
    )(xt,
      w1.astype(jnp.float32),
      b1.reshape(16, 1).astype(jnp.float32),
      w2p,
      b2p)

    return out_t[:3, :B].T                                   # back to (B, 3)


def init_params(key):
    """PyTorch-style U(-1/sqrt(fan_in), +1/sqrt(fan_in)) init, torch layouts."""
    k1, k2, k3, k4 = jax.random.split(key, 4)
    bound1 = 1.0 / jnp.sqrt(4.0)
    bound2 = 1.0 / jnp.sqrt(16.0)
    w1 = jax.random.uniform(k1, (16, 4), jnp.float32, -bound1, bound1)
    b1 = jax.random.uniform(k2, (16,), jnp.float32, -bound1, bound1)
    w2 = jax.random.uniform(k3, (3, 16), jnp.float32, -bound2, bound2)
    b2 = jax.random.uniform(k4, (3,), jnp.float32, -bound2, bound2)
    return w1, b1, w2, b2


def _ref(x, w1, b1, w2, b2):
    # pure-JAX reference (matches the PyTorch forward semantics)
    return jnp.maximum(x @ w1.T + b1, 0.0) @ w2.T + b2


if __name__ == "__main__":
    key = jax.random.PRNGKey(0)
    kx, kp = jax.random.split(key)
    w1, b1, w2, b2 = init_params(kp)

    # Iris-style micro-batch, 4 features.
    B = 8
    x = jax.random.normal(kx, (B, 4), dtype=jnp.float32)
    out = jax.block_until_ready(iris_classifier_forward(x, w1, b1, w2, b2))
    ref = _ref(x, w1, b1, w2, b2)
    assert out.shape == (B, 3)
    assert jnp.allclose(out, ref, atol=1e-5, rtol=1e-5)

    # Secondary check: non-multiple-of-tile batch with >1 grid step.
    B2 = 300
    x2 = jax.random.normal(jax.random.PRNGKey(1), (B2, 4), dtype=jnp.float32)
    out2 = jax.block_until_ready(
        iris_classifier_forward(x2, w1, b1, w2, b2, batch_tile=128))
    ref2 = _ref(x2, w1, b1, w2, b2)
    assert out2.shape == (B2, 3)
    assert jnp.allclose(out2, ref2, atol=1e-5, rtol=1e-5)

    print("KERNEL_OK")
</pallas_src>

<mosaic_0001>
module attributes {stable_mosaic.version = 11 : i64} {
  func.func @iris_mlp_kernel(%arg0: i32, %arg1: memref<4x128xf32, #tpu.memory_space<vmem>>, %arg2: memref<16x4xf32, #tpu.memory_space<vmem>>, %arg3: memref<16x1xf32, #tpu.memory_space<vmem>>, %arg4: memref<8x16xf32, #tpu.memory_space<vmem>>, %arg5: memref<8x1xf32, #tpu.memory_space<vmem>>, %arg6: memref<8x128xf32, #tpu.memory_space<vmem>>) attributes {dimension_semantics = [#tpu.dimension_semantics<parallel>], iteration_bounds = array<i64: 1>, scalar_prefetch = 0 : i64, scratch_operands = 0 : i64, tpu.core_type = #tpu.core_type<tc>, window_params = [{transform_indices = @transform_0, window_bounds = array<i64: 4, 128>}, {pipeline_mode = #tpu.pipeline_mode<synchronous>, transform_indices = @transform_1, window_bounds = array<i64: 16, 4>}, {pipeline_mode = #tpu.pipeline_mode<synchronous>, transform_indices = @transform_2, window_bounds = array<i64: 16, 1>}, {pipeline_mode = #tpu.pipeline_mode<synchronous>, transform_indices = @transform_3, window_bounds = array<i64: 8, 16>}, {pipeline_mode = #tpu.pipeline_mode<synchronous>, transform_indices = @transform_4, window_bounds = array<i64: 8, 1>}, {transform_indices = @transform_5, window_bounds = array<i64: 8, 128>}]} {
    %c0 = arith.constant 0 : index
    %c0_0 = arith.constant 0 : index
    %0 = vector.load %arg2[%c0, %c0_0] : memref<16x4xf32, #tpu.memory_space<vmem>>, vector<16x4xf32>
    %c0_1 = arith.constant 0 : index
    %c0_2 = arith.constant 0 : index
    %1 = vector.load %arg1[%c0_1, %c0_2] : memref<4x128xf32, #tpu.memory_space<vmem>>, vector<4x128xf32>
    %cst = arith.constant dense<0.000000e+00> : vector<16x128xf32>
    %2 = tpu.matmul %0, %1, %cst {dimension_numbers = #tpu.dot_dimension_numbers<[1], [0], [0], [1], [0, 0, 1, 1], [], []>} : vector<16x4xf32>, vector<4x128xf32>, vector<16x128xf32> -> vector<16x128xf32>
    %c0_3 = arith.constant 0 : index
    %c0_4 = arith.constant 0 : index
    %3 = vector.load %arg3[%c0_3, %c0_4] : memref<16x1xf32, #tpu.memory_space<vmem>>, vector<16x1xf32>
    %4 = vector.broadcast %3 : vector<16x1xf32> to vector<16x128xf32>
    %5 = arith.addf %2, %4 : vector<16x128xf32>
    %cst_5 = arith.constant 0.000000e+00 : f32
    %6 = vector.broadcast %cst_5 : f32 to vector<16x128xf32>
    %7 = arith.maximumf %5, %6 : vector<16x128xf32>
    %c0_6 = arith.constant 0 : index
    %c0_7 = arith.constant 0 : index
    %8 = vector.load %arg4[%c0_6, %c0_7] : memref<8x16xf32, #tpu.memory_space<vmem>>, vector<8x16xf32>
    %cst_8 = arith.constant dense<0.000000e+00> : vector<8x128xf32>
    %9 = tpu.matmul %8, %7, %cst_8 {dimension_numbers = #tpu.dot_dimension_numbers<[1], [0], [0], [1], [0, 0, 1, 1], [], []>} : vector<8x16xf32>, vector<16x128xf32>, vector<8x128xf32> -> vector<8x128xf32>
    %c0_9 = arith.constant 0 : index
    %c0_10 = arith.constant 0 : index
    %10 = vector.load %arg5[%c0_9, %c0_10] : memref<8x1xf32, #tpu.memory_space<vmem>>, vector<8x1xf32>
    %11 = vector.broadcast %10 : vector<8x1xf32> to vector<8x128xf32>
    %12 = arith.addf %9, %11 : vector<8x128xf32>
    %c0_11 = arith.constant 0 : index
    %c0_12 = arith.constant 0 : index
    %13 = vector.load %arg6[%c0_11, %c0_12] : memref<8x128xf32, #tpu.memory_space<vmem>>, vector<8x128xf32>
    tpu.vector_store %arg6[%c0_11, %c0_12], %12 {strides = array<i32>} : memref<8x128xf32, #tpu.memory_space<vmem>>, vector<8x128xf32>,
    return
  }
  func.func @transform_0(%arg0: i32) -> (i32, i32) {
    %c0_i32 = arith.constant 0 : i32
    %c0_i32_0 = arith.constant 0 : i32
    return %c0_i32, %arg0 : i32, i32
  }
  func.func @transform_1(%arg0: i32) -> (i32, i32) {
    %c0_i32 = arith.constant 0 : i32
    %c0_i32_0 = arith.constant 0 : i32
    %c0_i32_1 = arith.constant 0 : i32
    return %c0_i32, %c0_i32_0 : i32, i32
  }
  func.func @transform_2(%arg0: i32) -> (i32, i32) {
    %c0_i32 = arith.constant 0 : i32
    %c0_i32_0 = arith.constant 0 : i32
    %c0_i32_1 = arith.constant 0 : i32
    return %c0_i32, %c0_i32_0 : i32, i32
  }
  func.func @transform_3(%arg0: i32) -> (i32, i32) {
    %c0_i32 = arith.constant 0 : i32
    %c0_i32_0 = arith.constant 0 : i32
    %c0_i32_1 = arith.constant 0 : i32
    return %c0_i32, %c0_i32_0 : i32, i32
  }
  func.func @transform_4(%arg0: i32) -> (i32, i32) {
    %c0_i32 = arith.constant 0 : i32
    %c0_i32_0 = arith.constant 0 : i32
    %c0_i32_1 = arith.constant 0 : i32
    return %c0_i32, %c0_i32_0 : i32, i32
  }
  func.func @transform_5(%arg0: i32) -> (i32, i32) {
    %c0_i32 = arith.constant 0 : i32
    %c0_i32_0 = arith.constant 0 : i32
    return %c0_i32, %arg0 : i32, i32
  }
}

</mosaic_0001>

<bundles_post_ra>
// kernel: tpu_custom_call.1
= control target key start
LH: loop header
LB: loop body
LE: loop exit
PB: predicated region body
PF: predicated region fallthrough
CT: control target
= control target key end

     0   :  { %vm43_vm0 = vcmask 1043456   ;;  %vm36_vm1 = vcmask 31744   ;;  %s344_s0 = inlined_call_operand.vmem [shape: f32[4,128], index: 0, kind: input, shape index: {}]   ;;  %s345_s1 = inlined_call_operand.vmem [shape: f32[16,4], index: 1, kind: input, shape index: {}]   ;;  %s346_s2 = inlined_call_operand.vmem [shape: f32[16,1], index: 2, kind: input, shape index: {}]   ;;  %s347_s3 = inlined_call_operand.vmem [shape: f32[8,16], index: 3, kind: input, shape index: {}]   ;;  %s348_s4 = inlined_call_operand.vmem [shape: f32[8,1], index: 4, kind: input, shape index: {}]   ;;  %s349_s5 = inlined_call_operand.hbm [shape: f32[8,128], index: 5, kind: output, shape index: {}]  }
   0x1   :  { %v23_v0 = vld [vmem:[%s344_s0] sm:$0xf]  ;;  %v22_v2 = vld [vmem:[%s345_s1 + $0x8] sm:$0xff] }
   0x2   :  { %v21_v1 = vld [vmem:[%s345_s1] sm:$0xff]  ;;  %230 = vmatprep.subr.msk.mxu0 %vm43_vm0, %v23_v0 }
   0x3   :  { %232 = vmatprep.mubr.msk.f32.mxu0 %vm36_vm1, %v21_v1  ;;  %v24_v3 = vld [vmem:[%s346_s2] sm:$0xff] }
   0x4   :  { %10 = vsyncpa [#allocation3], 0  ;;  %231 = vmatpush3.msk.msra.mxu0 %vm43_vm0, %v23_v0  ;;  %v276_v4 = vmov 0   ;;  %v25_v5 = vld [vmem:[%s346_s2 + $0x8] sm:$0xff]  ;;  %v277_v6 = vmov 0.0|0.0   ;;  %vm278_vm2 = vmmov 0  }
   0x5   :  { %250 = vset.pattern.permute.xlu0 %v276_v4  ;;  %233 = vmatmul.mubr.msk.f32.vlgmr.msra.gmra.mrb[0].mxu0 %vm36_vm1, %v22_v2  ;;  %v279_v7 = vmov 0.0   ;;  %v125_v8 = vld [vmem:[%s348_s4] sm:$0xff]  ;;  %vm131_vm3 = vcmask 130048   ;;  %s280_s29 = smov [#allocation2]  }
   0x6   :  { %28 = vperm.xlu0 %250, %v24_v3   ;;  %251 = vset.pattern.permute.xlu1 %v276_v4  ;;  %v124_v18 = vld [vmem:[%s347_s3] sm:$0xff]  ;;  %s212_s4 = sshll.u32 %s280_s29, 4  ;;  %s213_s4 = int_to_ptr.vmem [resolvable:$true] %s212_s4 }
   0x7   :  { %242 = vmatprep.subr.bf16.mxu1 %v277_v6  ;;  %239 = vmatprep.mubr.msk.f32.mxu1 %vm278_vm2, %v279_v7  ;;  %s252_s30 = scalar_lea.vmem %s213_s4, 128  ;;  %p257_p1 = scmp.lt.s32.totalorder %s213_s4, %s213_s4 }
   0x8   :  { %128 = vperm.xlu1 %251, %v125_v8   ;;  %p253_p0 = scmp.ne.s32.totalorder %s213_s4, %s252_s30  ;;  %p258_p2 = scmp.lt.s32.totalorder %s252_s30, %s252_s30 }
   0xa   :  { %33 = vperm.xlu0 %250, %v25_v5   ;;  %p259_p3 = por %p258_p2, %p257_p1 }
   0xc   :  { %p260_p4 = pnand %p259_p3, %p253_p0 }
  0x85   :  { %v29_v9 = vpop.permute.xlu0 %28 }
  0x87   :  { %v129_v19 = vpop.permute.xlu1 %128 }
  0x89   :  { %v34_v10 = vpop.permute.xlu0 %33 }
  0xd8   :  { %v234_v11 = vpop.f32.mrb[0].mxu0 }
  0xd9   :  { %v119_v12 = vadd.f32 %v234_v11, %v34_v10  ;;  %v113_v13 = vpop.f32.mrb[1].mxu0 }
  0xda   :  { %v114_v14 = vadd.f32 %v113_v13, %v29_v9 }
  0xdb   :  { %v123_v15 = vmax.f32 %v119_v12, 0.0 }
  0xdc   :  { %v122_v16 = vmax.f32 %v114_v14, 0.0 }
  0xde   :  { %v243_v17 = vpack.c.bf16 %v123_v15, %v122_v16 }
  0xe0   :  { %244 = vmatpush3.bf16.msra.mxu1 %v243_v17 }
  0xe3   :  { %240 = vmatmul.mubr.msk.f32.vlgmr.msra.gmra.mrb[0].mxu1 %vm131_vm3, %v124_v18 }
 0x1b6   :  { %v201_v20 = vpop.f32.mrb[0].mxu1 }
 0x1b7   :  { %v202_v21 = vadd.f32 %v201_v20, %v129_v19  ;;  %v241_v22 = vpop.f32.mrb[1].mxu1 }
 0x1b9   :  { %205 = vst [vmem:[#allocation2] sm:$0xff] %v202_v21 }
 0x1ba   :  { %263 = shalt.err (!%p260_p4)
}
 0x1bb   :  { %s264_s3 = scalar_lea.hbm %s349_s5, 128 }
 0x1bc   :  { %p265_p5 = scmp.ne.s32.totalorder %s349_s5, %s264_s3  ;;  %p268_p6 = scmp.lt.u32.totalorder %s264_s3, %s349_s5 }
 0x1be   :  { %p270_p7 = pnand %p268_p6, %p265_p5 }
 0x1c0   :  { %273 = shalt.err (!%p270_p7)
}
 0x1c1   :  { %215 = dma.vmem_to_hbm [thread:$0]  %s213_s4, 128, %s349_s5, [#allocation3]  }
 0x1c2   :  { %274 = dma.done.wait [#allocation3], 128  }
 0x1c3   :  { %275 = vsyncadd [#allocation3], 4294967168 }
 0x1c4   :  { %219 = vsyncpa [#allocation3], 1 }

</bundles_post_ra>
